<compile_context>
chip_gen: v7x
topology: tpu7x:2x2x1
jax: 0.10.0
libtpu: 0.0.40
codegen_flags: <defaults>
</compile_context>

<pallas_src>
import jax
import jax.numpy as jnp
from jax.experimental import pallas as pl
from jax.experimental.pallas import tpu as pltpu

LANE = 128
SUBLANE = 8


def _round_up(x, m):
    return (x + m - 1) // m * m


def _cdiv(a, b):
    return (a + b - 1) // b


def _vmem_limit_bytes():
    """Generation-aware VMEM limit: half of physical VMEM, capped at 64 MiB.

    v5e/v6e (128 MiB physical) -> 64 MiB; v7x (64 MiB physical) -> 32 MiB.
    """
    cap = 64 * 1024 * 1024  # conservative default (v7x per-TensorCore)
    try:
        info = pltpu.get_tpu_info()
        cap = int(getattr(info, "vmem_capacity_bytes", cap)) or cap
    except Exception:
        pass
    return min(cap // 2, 64 * 1024 * 1024)


# ---------------------------------------------------------------------------
# Kernels
# ---------------------------------------------------------------------------
def _linear_kernel_single(x_ref, wt_ref, b_ref, o_ref):
    """Collapsed-K path: one MXU matmul per batch tile, bias fused into the store."""
    x = x_ref[...].astype(wt_ref.dtype)  # bf16 operands, f32 accumulation
    o_ref[...] = (
        jnp.dot(x, wt_ref[...], preferred_element_type=jnp.float32) + b_ref[...]
    ).astype(o_ref.dtype)


def _linear_kernel_kgrid(x_ref, wt_ref, b_ref, o_ref):
    """K-tiled path (huge feat_dim * num_classes). o_ref is f32 and resident across
    the reduction axis (its index_map ignores k), so accumulate straight into it."""
    k = pl.program_id(1)
    x = x_ref[...].astype(wt_ref.dtype)
    part = jnp.dot(x, wt_ref[...], preferred_element_type=jnp.float32)

    @pl.when(k == 0)
    def _init():
        o_ref[...] = part + b_ref[...]  # fold bias into the first store

    @pl.when(k != 0)
    def _acc():
        o_ref[...] += part


# ---------------------------------------------------------------------------
# Parameter prep (one-time, hoisted out of the forward pass)
# ---------------------------------------------------------------------------
def prepare_linear_params(weight, bias, *, compute_dtype=jnp.bfloat16):
    """weight: [num_classes, feat_dim] (nn.Linear layout), bias: [num_classes].

    Returns (wt, b2): wt = weight.T cast to compute_dtype with shape [D, C];
    b2 = bias as [1, C] float32. Store these; do NOT redo this per forward call.
    """
    wt = jnp.asarray(weight).T.astype(compute_dtype)            # [D, C]
    b2 = jnp.asarray(bias).astype(jnp.float32).reshape(1, -1)   # [1, C]
    return wt, b2


# ---------------------------------------------------------------------------
# Forward
# ---------------------------------------------------------------------------
def linear_classifier_fwd(features, wt, b2, *, max_tile_m=None):
    """features: [B, D]; wt: [D, C] (from prepare_linear_params); b2: [1, C].

    Returns [B, C] float32 = features @ W.T + b.
    """
    B, D = features.shape
    D2, C = wt.shape
    assert D == D2 and b2.shape == (1, C)

    vmem_limit = _vmem_limit_bytes()
    budget = vmem_limit // 2  # headroom for double buffering

    x_isz = jnp.dtype(features.dtype).itemsize
    w_isz = jnp.dtype(wt.dtype).itemsize
    c_vmem = max(C, LANE)  # in-VMEM lane padding of the class axis

    # ---- Reduction (feature) axis: collapse K whenever the weight slab fits VMEM.
    wt_vmem_bytes = D * c_vmem * w_isz
    collapse_k = wt_vmem_bytes <= max(8 * 1024 * 1024, budget // 4)
    if collapse_k:
        tile_k, n_k, D_pad = D, 1, D
    else:
        # Rare path: feat_dim * num_classes too big for VMEM -> tile the reduction.
        rows = (budget // 2) // (c_vmem * w_isz)
        tile_k = max(LANE, min(_round_up(D, LANE), (rows // LANE) * LANE))
        D_pad = _round_up(D, tile_k)
        n_k = D_pad // tile_k

    # ---- Batch axis: minimal-waste tiling; full-dim block when one tile suffices.
    if max_tile_m is None:
        per_row = tile_k * x_isz * 2 + c_vmem * 4 * 2
        max_tile_m = (budget - 2 * min(wt_vmem_bytes, budget // 2)) // max(per_row, 1)
        max_tile_m = max(SUBLANE, min(1024, (max_tile_m // SUBLANE) * SUBLANE))
    B8 = _round_up(B, SUBLANE)
    n_m = max(1, _cdiv(B8, max_tile_m))
    if n_m == 1 and B8 >= 256:
        n_m = 2  # give v7x's second TensorCore work; negligible cost on v5e/v6e
    if n_m == 1:
        tile_m, B_pad = B, B  # full-dim batch block: no padding, no activation copy
    else:
        tile_m = _round_up(_cdiv(B8, n_m), SUBLANE)
        B_pad = n_m * tile_m

    # ---- Zero-pad only when actually needed (zeros do not change the sums).
    x = features
    if B_pad != B or D_pad != D:
        x = jnp.pad(x, ((0, B_pad - B), (0, D_pad - D)))
    if D_pad != D:
        # TODO(synk): for the huge-D K-tiled path, hoist this pad into prepare_linear_params.
        wt = jnp.pad(wt, ((0, D_pad - D), (0, 0)))

    out_dtype = jnp.float32  # module output dtype; also required by in-place accumulation

    if collapse_k:
        grid = (n_m,)
        kernel = _linear_kernel_single
        in_specs = [
            pl.BlockSpec((tile_m, D_pad), lambda i: (i, 0)),
            pl.BlockSpec((D_pad, C), lambda i: (0, 0)),
            pl.BlockSpec((1, C), lambda i: (0, 0)),
        ]
        out_specs = pl.BlockSpec((tile_m, C), lambda i: (i, 0))
        dim_sem = ("parallel",)
    else:
        grid = (n_m, n_k)  # reduction axis last
        kernel = _linear_kernel_kgrid
        in_specs = [
            pl.BlockSpec((tile_m, tile_k), lambda i, k: (i, k)),
            pl.BlockSpec((tile_k, C), lambda i, k: (k, 0)),
            pl.BlockSpec((1, C), lambda i, k: (0, 0)),
        ]
        out_specs = pl.BlockSpec((tile_m, C), lambda i, k: (i, 0))
        dim_sem = ("parallel", "arbitrary")

    out = pl.pallas_call(
        kernel,
        out_shape=jax.ShapeDtypeStruct((B_pad, C), out_dtype),
        grid_spec=pltpu.PrefetchScalarGridSpec(
            num_scalar_prefetch=0,
            grid=grid,
            in_specs=in_specs,
            out_specs=out_specs,
        ),
        compiler_params=pltpu.CompilerParams(
            dimension_semantics=dim_sem,
            vmem_limit_bytes=vmem_limit,
        ),
    )(x, wt, b2)

    return out if B_pad == B else out[:B]


def linear_classifier(features, weight, bias):
    """Convenience wrapper matching LinearClassifier.forward exactly.
    (Prefer prepare_linear_params + linear_classifier_fwd to amortize param prep.)"""
    wt, b2 = prepare_linear_params(weight, bias)
    return linear_classifier_fwd(features, wt, b2)


if __name__ == "__main__":
    key = jax.random.PRNGKey(0)
    kx, kw, kb = jax.random.split(key, 3)

    # LinearClassifier(name='resnet50', num_classes=10): feat_dim = 2048.
    B, FEAT_DIM, NUM_CLASSES = 8, 2048, 10
    x = jax.random.normal(kx, (B, FEAT_DIM), dtype=jnp.float32)
    w = 0.02 * jax.random.normal(kw, (NUM_CLASSES, FEAT_DIM), dtype=jnp.float32)
    b = 0.1 * jax.random.normal(kb, (NUM_CLASSES,), dtype=jnp.float32)

    wt, b2 = prepare_linear_params(w, b)        # one-time parameter prep
    out = linear_classifier_fwd(x, wt, b2)
    out = jax.block_until_ready(out)
    assert out.shape == (B, NUM_CLASSES)

    # Reference with the same bf16 operand quantization (f32 accumulation).
    xq = x.astype(jnp.bfloat16).astype(jnp.float32)
    wq = w.astype(jnp.bfloat16).astype(jnp.float32)
    ref_bf16 = jnp.dot(xq, wq.T, precision=jax.lax.Precision.HIGHEST) + b[None, :]
    assert jnp.allclose(out, ref_bf16, atol=1e-3, rtol=1e-3), "mismatch vs bf16 reference"

    # Sanity vs the full-precision reference (looser: operands were bf16-quantized).
    ref_f32 = jnp.dot(x, w.T, precision=jax.lax.Precision.HIGHEST) + b[None, :]
    assert jnp.allclose(out, ref_f32, atol=5e-2, rtol=5e-2), "mismatch vs f32 reference"

    print("KERNEL_OK")
</pallas_src>

<mosaic_0001>
module attributes {stable_mosaic.version = 11 : i64} {
  func.func @_linear_kernel_single(%arg0: i32, %arg1: memref<8x2048xf32, #tpu.memory_space<vmem>>, %arg2: memref<2048x10xbf16, #tpu.memory_space<vmem>>, %arg3: memref<1x10xf32, #tpu.memory_space<vmem>>, %arg4: memref<8x10xf32, #tpu.memory_space<vmem>>) attributes {dimension_semantics = [#tpu.dimension_semantics<parallel>], iteration_bounds = array<i64: 1>, scalar_prefetch = 0 : i64, scratch_operands = 0 : i64, tpu.core_type = #tpu.core_type<tc>, window_params = [{transform_indices = @transform_0, window_bounds = array<i64: 8, 2048>}, {pipeline_mode = #tpu.pipeline_mode<synchronous>, transform_indices = @transform_1, window_bounds = array<i64: 2048, 10>}, {pipeline_mode = #tpu.pipeline_mode<synchronous>, transform_indices = @transform_2, window_bounds = array<i64: 1, 10>}, {transform_indices = @transform_3, window_bounds = array<i64: 8, 10>}]} {
    %c0 = arith.constant 0 : index
    %c0_0 = arith.constant 0 : index
    %0 = vector.load %arg1[%c0, %c0_0] : memref<8x2048xf32, #tpu.memory_space<vmem>>, vector<8x2048xf32>
    %1 = arith.truncf %0 : vector<8x2048xf32> to vector<8x2048xbf16>
    %c0_1 = arith.constant 0 : index
    %c0_2 = arith.constant 0 : index
    %2 = vector.load %arg2[%c0_1, %c0_2] : memref<2048x10xbf16, #tpu.memory_space<vmem>>, vector<2048x10xbf16>
    %cst = arith.constant dense<0.000000e+00> : vector<8x10xf32>
    %3 = tpu.matmul %1, %2, %cst {dimension_numbers = #tpu.dot_dimension_numbers<[1], [0], [0], [1], [0, 0, 1, 1], [], []>} : vector<8x2048xbf16>, vector<2048x10xbf16>, vector<8x10xf32> -> vector<8x10xf32>
    %c0_3 = arith.constant 0 : index
    %c0_4 = arith.constant 0 : index
    %4 = vector.load %arg3[%c0_3, %c0_4] : memref<1x10xf32, #tpu.memory_space<vmem>>, vector<1x10xf32>
    %5 = vector.broadcast %4 : vector<1x10xf32> to vector<8x10xf32>
    %6 = arith.addf %3, %5 : vector<8x10xf32>
    %c0_5 = arith.constant 0 : index
    %c0_6 = arith.constant 0 : index
    %7 = vector.load %arg4[%c0_5, %c0_6] : memref<8x10xf32, #tpu.memory_space<vmem>>, vector<8x10xf32>
    tpu.vector_store %arg4[%c0_5, %c0_6], %6 {strides = array<i32>} : memref<8x10xf32, #tpu.memory_space<vmem>>, vector<8x10xf32>,
    return
  }
  func.func @transform_0(%arg0: i32) -> (i32, i32) {
    %c0_i32 = arith.constant 0 : i32
    %c0_i32_0 = arith.constant 0 : i32
    return %arg0, %c0_i32 : i32, i32
  }
  func.func @transform_1(%arg0: i32) -> (i32, i32) {
    %c0_i32 = arith.constant 0 : i32
    %c0_i32_0 = arith.constant 0 : i32
    %c0_i32_1 = arith.constant 0 : i32
    return %c0_i32, %c0_i32_0 : i32, i32
  }
  func.func @transform_2(%arg0: i32) -> (i32, i32) {
    %c0_i32 = arith.constant 0 : i32
    %c0_i32_0 = arith.constant 0 : i32
    %c0_i32_1 = arith.constant 0 : i32
    return %c0_i32, %c0_i32_0 : i32, i32
  }
  func.func @transform_3(%arg0: i32) -> (i32, i32) {
    %c0_i32 = arith.constant 0 : i32
    %c0_i32_0 = arith.constant 0 : i32
    return %arg0, %c0_i32 : i32, i32
  }
}

</mosaic_0001>

<bundles_post_ra>
// kernel: tpu_custom_call.1
= control target key start
LH: loop header
LB: loop body
LE: loop exit
PB: predicated region body
PF: predicated region fallthrough
CT: control target
= control target key end

     0   :  { %s2341_s0 = inlined_call_operand.vmem [shape: f32[8,2048], index: 0, kind: input, shape index: {}]   ;;  %s2342_s1 = inlined_call_operand.vmem [shape: bf16[2048,10], index: 1, kind: input, shape index: {}]   ;;  %s2343_s2 = inlined_call_operand.vmem [shape: f32[1,10], index: 2, kind: input, shape index: {}]   ;;  %s2344_s3 = inlined_call_operand.hbm [shape: f32[8,10], index: 3, kind: output, shape index: {}]  }
   0x1   :  { %v1721_v0 = vld [vmem:[%s2342_s1 + $0x40] sm:$0xff]   ;;  %v1725_v4 = vld [vmem:[%s2342_s1 + $0x48] sm:$0xff]   ;;  %v1729_v8 = vld [vmem:[%s2342_s1 + $0x50] sm:$0xff]  }
   0x2   :  { %v1722_v1 = vld [vmem:[%s2342_s1 + $0xc0] sm:$0xff]   ;;  %1544 = vmatprep.subr.bf16.mxu0 %v1721_v0  ;;  %v1726_v5 = vld [vmem:[%s2342_s1 + $0xc8] sm:$0xff]   ;;  %v1730_v9 = vld [vmem:[%s2342_s1 + $0xd0] sm:$0xff]  }
   0x3   :  { %v1723_v2 = vld [vmem:[%s2342_s1] sm:$0xff]   ;;  %1566 = vmatprep.subr.bf16.mxu1 %v1722_v1  ;;  %v1727_v6 = vld [vmem:[%s2342_s1 + $0x8] sm:$0xff]   ;;  %v1731_v10 = vld [vmem:[%s2342_s1 + $0x10] sm:$0xff]  }
   0x4   :  { %v1724_v3 = vld [vmem:[%s2342_s1 + $0x80] sm:$0xff]   ;;  %1545 = vmatpush3.bf16.msra.mxu0 %v1723_v2  ;;  %v1728_v7 = vld [vmem:[%s2342_s1 + $0x88] sm:$0xff]   ;;  %v1732_v11 = vld [vmem:[%s2342_s1 + $0x90] sm:$0xff]  }
   0x5   :  { %1567 = vmatpush3.bf16.msra.mxu1 %v1724_v3  ;;  %1546 = vmatprep.subr.bf16.mxu0 %v1725_v4  ;;  %v1733_v12 = vld [vmem:[%s2342_s1 + $0x58] sm:$0xff]   ;;  %v1737_v16 = vld [vmem:[%s2342_s1 + $0x60] sm:$0xff]   ;;  %v1741_v20 = vld [vmem:[%s2342_s1 + $0x68] sm:$0xff]  }
   0x6   :  { %1568 = vmatprep.subr.bf16.mxu1 %v1726_v5  ;;  %v1734_v13 = vld [vmem:[%s2342_s1 + $0xd8] sm:$0xff]   ;;  %v1738_v17 = vld [vmem:[%s2342_s1 + $0xe0] sm:$0xff]   ;;  %v1742_v21 = vld [vmem:[%s2342_s1 + $0xe8] sm:$0xff]  }
   0x7   :  { %v1735_v14 = vld [vmem:[%s2342_s1 + $0x18] sm:$0xff]   ;;  %v1739_v18 = vld [vmem:[%s2342_s1 + $0x20] sm:$0xff]   ;;  %v1743_v22 = vld [vmem:[%s2342_s1 + $0x28] sm:$0xff]  }
   0x8   :  { %1547 = vmatpush3.bf16.msra.mxu0 %v1727_v6  ;;  %v1736_v15 = vld [vmem:[%s2342_s1 + $0x98] sm:$0xff]   ;;  %v1740_v19 = vld [vmem:[%s2342_s1 + $0xa0] sm:$0xff]   ;;  %v1744_v23 = vld [vmem:[%s2342_s1 + $0xa8] sm:$0xff]  }
   0x9   :  { %1569 = vmatpush3.bf16.msra.mxu1 %v1728_v7  ;;  %1548 = vmatprep.subr.bf16.mxu0 %v1729_v8  ;;  %v1745_v24 = vld [vmem:[%s2342_s1 + $0x70] sm:$0xff]   ;;  %v1749_v28 = vld [vmem:[%s2342_s1 + $0x78] sm:$0xff]   ;;  %v17_v32 = vld [vmem:[%s2341_s0 + $0x8] sm:$0xff] }
   0xa   :  { %1570 = vmatprep.subr.bf16.mxu1 %v1730_v9  ;;  %v1746_v25 = vld [vmem:[%s2342_s1 + $0xf0] sm:$0xff]   ;;  %v1750_v29 = vld [vmem:[%s2342_s1 + $0xf8] sm:$0xff]   ;;  %v16_v34 = vld [vmem:[%s2341_s0] sm:$0xff]  ;;  %v33_v35 = vpack.c.bf16 %v17_v32, %v17_v32 }
   0xb   :  { %v1747_v26 = vld [vmem:[%s2342_s1 + $0x30] sm:$0xff]   ;;  %v1751_v30 = vld [vmem:[%s2342_s1 + $0x38] sm:$0xff]   ;;  %v32_v37 = vpack.c.bf16 %v16_v34, %v16_v34  ;;  %v1753_v40 = vld [vmem:[%s2342_s1 + $0x140] sm:$0xff]  }
   0xc   :  { %1549 = vmatpush3.bf16.msra.mxu0 %v1731_v10  ;;  %v1748_v27 = vld [vmem:[%s2342_s1 + $0xb0] sm:$0xff]   ;;  %v1752_v31 = vld [vmem:[%s2342_s1 + $0xb8] sm:$0xff]   ;;  %1111 = vmatprep.mubr.bf16.mxu0 %v33_v35  ;;  %v1754_v41 = vld [vmem:[%s2342_s1 + $0x1c0] sm:$0xff]  }
   0xd   :  { %1571 = vmatpush3.bf16.msra.mxu1 %v1732_v11  ;;  %1550 = vmatprep.subr.bf16.mxu0 %v1733_v12  ;;  %v19_v33 = vld [vmem:[%s2341_s0 + $0x18] sm:$0xff]  ;;  %v18_v38 = vld [vmem:[%s2341_s0 + $0x10] sm:$0xff]  ;;  %v1755_v42 = vld [vmem:[%s2342_s1 + $0x100] sm:$0xff]  }
   0xe   :  { %1572 = vmatprep.subr.bf16.mxu1 %v1734_v13  ;;  %v35_v36 = vpack.c.bf16 %v19_v33, %v19_v33  ;;  %v34_v39 = vpack.c.bf16 %v18_v38, %v18_v38  ;;  %v1756_v43 = vld [vmem:[%s2342_s1 + $0x180] sm:$0xff]   ;;  %v1757_v44 = vld [vmem:[%s2342_s1 + $0x148] sm:$0xff]   ;;  %v1761_v48 = vld [vmem:[%s2342_s1 + $0x150] sm:$0xff]  }
   0xf   :  { %v1758_v45 = vld [vmem:[%s2342_s1 + $0x1c8] sm:$0xff]   ;;  %v1762_v49 = vld [vmem:[%s2342_s1 + $0x1d0] sm:$0xff]   ;;  %v1765_v52 = vld [vmem:[%s2342_s1 + $0x158] sm:$0xff]  }
  0x10   :  { %1551 = vmatpush3.bf16.msra.mxu0 %v1735_v14  ;;  %1151 = vmatprep.mubr.bf16.mxu1 %v35_v36  ;;  %v1759_v46 = vld [vmem:[%s2342_s1 + $0x108] sm:$0xff]   ;;  %v1763_v50 = vld [vmem:[%s2342_s1 + $0x110] sm:$0xff]   ;;  %v1766_v53 = vld [vmem:[%s2342_s1 + $0x1d8] sm:$0xff]  }
  0x11   :  { %1573 = vmatpush3.bf16.msra.mxu1 %v1736_v15  ;;  %1552 = vmatprep.subr.bf16.mxu0 %v1737_v16  ;;  %v1760_v47 = vld [vmem:[%s2342_s1 + $0x188] sm:$0xff]   ;;  %v1764_v51 = vld [vmem:[%s2342_s1 + $0x190] sm:$0xff]   ;;  %v1767_v54 = vld [vmem:[%s2342_s1 + $0x118] sm:$0xff]  }
  0x12   :  { %1574 = vmatprep.subr.bf16.mxu1 %v1738_v17  ;;  %v1768_v55 = vld [vmem:[%s2342_s1 + $0x198] sm:$0xff]   ;;  %v1769_v56 = vld [vmem:[%s2342_s1 + $0x160] sm:$0xff]   ;;  %v1773_v60 = vld [vmem:[%s2342_s1 + $0x168] sm:$0xff]  }
  0x13   :  { %v1770_v57 = vld [vmem:[%s2342_s1 + $0x1e0] sm:$0xff]   ;;  %v1774_v61 = vld [vmem:[%s2342_s1 + $0x1e8] sm:$0xff]   ;;  %v1777_v0 = vld [vmem:[%s2342_s1 + $0x170] sm:$0xff]  }
  0x14   :  { %1553 = vmatpush3.bf16.msra.mxu0 %v1739_v18  ;;  %v1771_v58 = vld [vmem:[%s2342_s1 + $0x120] sm:$0xff]   ;;  %v1775_v62 = vld [vmem:[%s2342_s1 + $0x128] sm:$0xff]   ;;  %v1778_v1 = vld [vmem:[%s2342_s1 + $0x1f0] sm:$0xff]  }
  0x15   :  { %1575 = vmatpush3.bf16.msra.mxu1 %v1740_v19  ;;  %1554 = vmatprep.subr.bf16.mxu0 %v1741_v20  ;;  %v1772_v59 = vld [vmem:[%s2342_s1 + $0x1a0] sm:$0xff]   ;;  %v1776_v63 = vld [vmem:[%s2342_s1 + $0x1a8] sm:$0xff]   ;;  %v1779_v2 = vld [vmem:[%s2342_s1 + $0x130] sm:$0xff]  }
  0x16   :  { %1576 = vmatprep.subr.bf16.mxu1 %v1742_v21  ;;  %v1780_v3 = vld [vmem:[%s2342_s1 + $0x1b0] sm:$0xff]   ;;  %v1781_v4 = vld [vmem:[%s2342_s1 + $0x178] sm:$0xff]   ;;  %v21_v8 = vld [vmem:[%s2341_s0 + $0x28] sm:$0xff] }
  0x17   :  { %v1782_v5 = vld [vmem:[%s2342_s1 + $0x1f8] sm:$0xff]   ;;  %v37_v10 = vpack.c.bf16 %v21_v8, %v21_v8  ;;  %v20_v12 = vld [vmem:[%s2341_s0 + $0x20] sm:$0xff]  ;;  %v22_v13 = vld [vmem:[%s2341_s0 + $0x30] sm:$0xff] }
  0x18   :  { %1555 = vmatpush3.bf16.msra.mxu0 %v1743_v22  ;;  %v1783_v6 = vld [vmem:[%s2342_s1 + $0x138] sm:$0xff]   ;;  %v36_v14 = vpack.c.bf16 %v20_v12, %v20_v12  ;;  %v38_v15 = vpack.c.bf16 %v22_v13, %v22_v13  ;;  %v1785_v16 = vld [vmem:[%s2342_s1 + $0x240] sm:$0xff]   ;;  %v1789_v20 = vld [vmem:[%s2342_s1 + $0x248] sm:$0xff]  }
  0x19   :  { %1577 = vmatpush3.bf16.msra.mxu1 %v1744_v23  ;;  %1556 = vmatprep.subr.bf16.mxu0 %v1745_v24  ;;  %v1784_v7 = vld [vmem:[%s2342_s1 + $0x1b8] sm:$0xff]   ;;  %v1786_v17 = vld [vmem:[%s2342_s1 + $0x2c0] sm:$0xff]   ;;  %v1790_v21 = vld [vmem:[%s2342_s1 + $0x2c8] sm:$0xff]  }
  0x1a   :  { %1578 = vmatprep.subr.bf16.mxu1 %v1746_v25  ;;  %v23_v9 = vld [vmem:[%s2341_s0 + $0x38] sm:$0xff]  ;;  %v1787_v18 = vld [vmem:[%s2342_s1 + $0x200] sm:$0xff]   ;;  %v1791_v22 = vld [vmem:[%s2342_s1 + $0x208] sm:$0xff]  }
  0x1b   :  { %v39_v11 = vpack.c.bf16 %v23_v9, %v23_v9  ;;  %v1788_v19 = vld [vmem:[%s2342_s1 + $0x280] sm:$0xff]   ;;  %v1792_v23 = vld [vmem:[%s2342_s1 + $0x288] sm:$0xff]   ;;  %v1793_v24 = vld [vmem:[%s2342_s1 + $0x250] sm:$0xff]  }
  0x1c   :  { %1557 = vmatpush3.bf16.msra.mxu0 %v1747_v26  ;;  %v1794_v25 = vld [vmem:[%s2342_s1 + $0x2d0] sm:$0xff]   ;;  %v1801_v32 = vld [vmem:[%s2342_s1 + $0x260] sm:$0xff]   ;;  %v1805_v36 = vld [vmem:[%s2342_s1 + $0x268] sm:$0xff]  }
  0x1d   :  { %1579 = vmatpush3.bf16.msra.mxu1 %v1748_v27  ;;  %1558 = vmatprep.subr.bf16.mxu0 %v1749_v28  ;;  %v1795_v26 = vld [vmem:[%s2342_s1 + $0x210] sm:$0xff]   ;;  %v1797_v28 = vld [vmem:[%s2342_s1 + $0x258] sm:$0xff]   ;;  %v1802_v33 = vld [vmem:[%s2342_s1 + $0x2e0] sm:$0xff]  }
  0x1e   :  { %1580 = vmatprep.subr.bf16.mxu1 %v1750_v29  ;;  %v1796_v27 = vld [vmem:[%s2342_s1 + $0x290] sm:$0xff]   ;;  %v1798_v29 = vld [vmem:[%s2342_s1 + $0x2d8] sm:$0xff]   ;;  %v1803_v34 = vld [vmem:[%s2342_s1 + $0x220] sm:$0xff]  }
  0x1f   :  { %v1804_v35 = vld [vmem:[%s2342_s1 + $0x2a0] sm:$0xff]   ;;  %v1807_v38 = vld [vmem:[%s2342_s1 + $0x228] sm:$0xff]  }
  0x20   :  { %1559 = vmatpush3.bf16.msra.mxu0 %v1751_v30  ;;  %v1799_v30 = vld [vmem:[%s2342_s1 + $0x218] sm:$0xff]   ;;  %v1833_v8 = vld [vmem:[%s2342_s1 + $0x360] sm:$0xff]   ;;  %v1837_v12 = vld [vmem:[%s2342_s1 + $0x368] sm:$0xff]  }
  0x21   :  { %1581 = vmatpush3.bf16.msra.mxu1 %v1752_v31  ;;  %1588 = vmatprep.subr.bf16.mxu0 %v1753_v40  ;;  %v1800_v31 = vld [vmem:[%s2342_s1 + $0x298] sm:$0xff]   ;;  %v1809_v40 = vld [vmem:[%s2342_s1 + $0x270] sm:$0xff]   ;;  %v1834_v9 = vld [vmem:[%s2342_s1 + $0x3e0] sm:$0xff]  }
  0x22   :  { %1610 = vmatprep.subr.bf16.mxu1 %v1754_v41  ;;  %v1810_v41 = vld [vmem:[%s2342_s1 + $0x2f0] sm:$0xff]   ;;  %v1838_v13 = vld [vmem:[%s2342_s1 + $0x3e8] sm:$0xff]  }
  0x23   :  { %1112 = vmatmul.mubr.bf16.vlgmr.msra.gmra.mrb[0].mxu0 %v32_v37  ;;  %v1806_v37 = vld [vmem:[%s2342_s1 + $0x2e8] sm:$0xff]  }
  0x24   :  { %1152 = vmatmul.mubr.bf16.vlgmr.msra.gmra.mrb[0].mxu1 %v34_v39  ;;  %1589 = vmatpush3.bf16.msra.mxu0 %v1755_v42  ;;  %v1808_v39 = vld [vmem:[%s2342_s1 + $0x2a8] sm:$0xff]   ;;  %v1811_v42 = vld [vmem:[%s2342_s1 + $0x230] sm:$0xff]  }
  0x25   :  { %1611 = vmatpush3.bf16.msra.mxu1 %v1756_v43  ;;  %1590 = vmatprep.subr.bf16.mxu0 %v1757_v44  ;;  %v1812_v43 = vld [vmem:[%s2342_s1 + $0x2b0] sm:$0xff]   ;;  %v1813_v44 = vld [vmem:[%s2342_s1 + $0x278] sm:$0xff]  }
  0x26   :  { %1612 = vmatprep.subr.bf16.mxu1 %v1758_v45  ;;  %1191 = vmatprep.mubr.bf16.mxu0 %v37_v10  ;;  %v1814_v45 = vld [vmem:[%s2342_s1 + $0x2f8] sm:$0xff]   ;;  %v1835_v10 = vld [vmem:[%s2342_s1 + $0x320] sm:$0xff]  }
  0x27   :  { %1231 = vmatprep.mubr.bf16.mxu1 %v39_v11  ;;  %v1836_v11 = vld [vmem:[%s2342_s1 + $0x3a0] sm:$0xff]  }
  0x28   :  { %1591 = vmatpush3.bf16.msra.mxu0 %v1759_v46  ;;  %v1815_v46 = vld [vmem:[%s2342_s1 + $0x238] sm:$0xff]  }
  0x29   :  { %1613 = vmatpush3.bf16.msra.mxu1 %v1760_v47  ;;  %1592 = vmatprep.subr.bf16.mxu0 %v1761_v48  ;;  %v1816_v47 = vld [vmem:[%s2342_s1 + $0x2b8] sm:$0xff]   ;;  %v25_v48 = vld [vmem:[%s2341_s0 + $0x48] sm:$0xff] }
  0x2a   :  { %1614 = vmatprep.subr.bf16.mxu1 %v1762_v49  ;;  %v41_v49 = vpack.c.bf16 %v25_v48, %v25_v48 }
  0x2c   :  { %1593 = vmatpush3.bf16.msra.mxu0 %v1763_v50  ;;  %v27_v50 = vld [vmem:[%s2341_s0 + $0x58] sm:$0xff] }
  0x2d   :  { %1615 = vmatpush3.bf16.msra.mxu1 %v1764_v51  ;;  %1594 = vmatprep.subr.bf16.mxu0 %v1765_v52  ;;  %v24_v51 = vld [vmem:[%s2341_s0 + $0x40] sm:$0xff]  ;;  %v26_v52 = vld [vmem:[%s2341_s0 + $0x50] sm:$0xff] }
  0x2e   :  { %1616 = vmatprep.subr.bf16.mxu1 %v1766_v53  ;;  %v43_v53 = vpack.c.bf16 %v27_v50, %v27_v50 }
  0x30   :  { %1595 = vmatpush3.bf16.msra.mxu0 %v1767_v54  ;;  %v40_v54 = vpack.c.bf16 %v24_v51, %v24_v51 }
  0x31   :  { %1617 = vmatpush3.bf16.msra.mxu1 %v1768_v55  ;;  %1596 = vmatprep.subr.bf16.mxu0 %v1769_v56  ;;  %v42_v55 = vpack.c.bf16 %v26_v52, %v26_v52  ;;  %v1817_v56 = vld [vmem:[%s2342_s1 + $0x340] sm:$0xff]  }
  0x32   :  { %1618 = vmatprep.subr.bf16.mxu1 %v1770_v57  ;;  %v1818_v57 = vld [vmem:[%s2342_s1 + $0x3c0] sm:$0xff]  }
  0x34   :  { %1597 = vmatpush3.bf16.msra.mxu0 %v1771_v58  ;;  %v1819_v58 = vld [vmem:[%s2342_s1 + $0x300] sm:$0xff]  }
  0x35   :  { %1619 = vmatpush3.bf16.msra.mxu1 %v1772_v59  ;;  %1598 = vmatprep.subr.bf16.mxu0 %v1773_v60  ;;  %v1820_v59 = vld [vmem:[%s2342_s1 + $0x380] sm:$0xff]   ;;  %v1821_v60 = vld [vmem:[%s2342_s1 + $0x348] sm:$0xff]  }
  0x36   :  { %1620 = vmatprep.subr.bf16.mxu1 %v1774_v61  ;;  %v1822_v61 = vld [vmem:[%s2342_s1 + $0x3c8] sm:$0xff]  }
  0x38   :  { %1599 = vmatpush3.bf16.msra.mxu0 %v1775_v62  ;;  %v1823_v62 = vld [vmem:[%s2342_s1 + $0x308] sm:$0xff]  }
  0x39   :  { %1621 = vmatpush3.bf16.msra.mxu1 %v1776_v63  ;;  %1600 = vmatprep.subr.bf16.mxu0 %v1777_v0  ;;  %v1824_v63 = vld [vmem:[%s2342_s1 + $0x388] sm:$0xff]   ;;  %v1825_v0 = vld [vmem:[%s2342_s1 + $0x350] sm:$0xff]  }
  0x3a   :  { %1622 = vmatprep.subr.bf16.mxu1 %v1778_v1  ;;  %v1826_v1 = vld [vmem:[%s2342_s1 + $0x3d0] sm:$0xff]  }
  0x3c   :  { %1601 = vmatpush3.bf16.msra.mxu0 %v1779_v2  ;;  %v1827_v2 = vld [vmem:[%s2342_s1 + $0x310] sm:$0xff]  }
  0x3d   :  { %1623 = vmatpush3.bf16.msra.mxu1 %v1780_v3  ;;  %1602 = vmatprep.subr.bf16.mxu0 %v1781_v4  ;;  %v1828_v3 = vld [vmem:[%s2342_s1 + $0x390] sm:$0xff]   ;;  %v1829_v4 = vld [vmem:[%s2342_s1 + $0x358] sm:$0xff]  }
  0x3e   :  { %1624 = vmatprep.subr.bf16.mxu1 %v1782_v5  ;;  %v1830_v5 = vld [vmem:[%s2342_s1 + $0x3d8] sm:$0xff]  }
  0x40   :  { %1603 = vmatpush3.bf16.msra.mxu0 %v1783_v6  ;;  %v1831_v6 = vld [vmem:[%s2342_s1 + $0x318] sm:$0xff]  }
  0x41   :  { %1625 = vmatpush3.bf16.msra.mxu1 %v1784_v7  ;;  %1632 = vmatprep.subr.bf16.mxu0 %v1785_v16  ;;  %v1832_v7 = vld [vmem:[%s2342_s1 + $0x398] sm:$0xff]   ;;  %v1841_v16 = vld [vmem:[%s2342_s1 + $0x370] sm:$0xff]  }
  0x42   :  { %1654 = vmatprep.subr.bf16.mxu1 %v1786_v17  ;;  %v1842_v17 = vld [vmem:[%s2342_s1 + $0x3f0] sm:$0xff]  }
  0x43   :  { %1192 = vmatmul.mubr.bf16.vlgmr.msra.gmra.mrb[4].mxu0 %v36_v14  ;;  %v1839_v14 = vld [vmem:[%s2342_s1 + $0x328] sm:$0xff]  }
  0x44   :  { %1232 = vmatmul.mubr.bf16.vlgmr.msra.gmra.mrb[4].mxu1 %v38_v15  ;;  %1633 = vmatpush3.bf16.msra.mxu0 %v1787_v18  ;;  %v1840_v15 = vld [vmem:[%s2342_s1 + $0x3a8] sm:$0xff]   ;;  %v1843_v18 = vld [vmem:[%s2342_s1 + $0x330] sm:$0xff]  }
  0x45   :  { %1655 = vmatpush3.bf16.msra.mxu1 %v1788_v19  ;;  %1634 = vmatprep.subr.bf16.mxu0 %v1789_v20  ;;  %v1844_v19 = vld [vmem:[%s2342_s1 + $0x3b0] sm:$0xff]   ;;  %v1845_v20 = vld [vmem:[%s2342_s1 + $0x378] sm:$0xff]  }
  0x46   :  { %1656 = vmatprep.subr.bf16.mxu1 %v1790_v21  ;;  %1271 = vmatprep.mubr.bf16.mxu0 %v41_v49  ;;  %v1846_v21 = vld [vmem:[%s2342_s1 + $0x3f8] sm:$0xff]  }
  0x47   :  { %1311 = vmatprep.mubr.bf16.mxu1 %v43_v53 }
  0x48   :  { %1635 = vmatpush3.bf16.msra.mxu0 %v1791_v22  ;;  %v1847_v22 = vld [vmem:[%s2342_s1 + $0x338] sm:$0xff]  }
  0x49   :  { %1657 = vmatpush3.bf16.msra.mxu1 %v1792_v23  ;;  %1636 = vmatprep.subr.bf16.mxu0 %v1793_v24  ;;  %v1848_v23 = vld [vmem:[%s2342_s1 + $0x3b8] sm:$0xff]   ;;  %v29_v24 = vld [vmem:[%s2341_s0 + $0x68] sm:$0xff] }
  0x4a   :  { %1658 = vmatprep.subr.bf16.mxu1 %v1794_v25  ;;  %v31_v25 = vld [vmem:[%s2341_s0 + $0x78] sm:$0xff] }
  0x4c   :  { %1637 = vmatpush3.bf16.msra.mxu0 %v1795_v26  ;;  %v28_v26 = vld [vmem:[%s2341_s0 + $0x60] sm:$0xff] }
  0x4d   :  { %1659 = vmatpush3.bf16.msra.mxu1 %v1796_v27  ;;  %1638 = vmatprep.subr.bf16.mxu0 %v1797_v28  ;;  %v45_v27 = vpack.c.bf16 %v29_v24, %v29_v24  ;;  %v47_v28 = vpack.c.bf16 %v31_v25, %v31_v25 }
  0x4e   :  { %1660 = vmatprep.subr.bf16.mxu1 %v1798_v29  ;;  %v44_v29 = vpack.c.bf16 %v28_v26, %v28_v26 }
  0x50   :  { %1639 = vmatpush3.bf16.msra.mxu0 %v1799_v30  ;;  %v30_v30 = vld [vmem:[%s2341_s0 + $0x70] sm:$0xff] }
  0x51   :  { %1661 = vmatpush3.bf16.msra.mxu1 %v1800_v31  ;;  %1640 = vmatprep.subr.bf16.mxu0 %v1801_v32 }
  0x52   :  { %1662 = vmatprep.subr.bf16.mxu1 %v1802_v33 }
  0x54   :  { %1641 = vmatpush3.bf16.msra.mxu0 %v1803_v34 }
  0x55   :  { %1663 = vmatpush3.bf16.msra.mxu1 %v1804_v35  ;;  %1642 = vmatprep.subr.bf16.mxu0 %v1805_v36 }
  0x56   :  { %1664 = vmatprep.subr.bf16.mxu1 %v1806_v37 }
  0x58   :  { %1643 = vmatpush3.bf16.msra.mxu0 %v1807_v38 }
  0x59   :  { %1665 = vmatpush3.bf16.msra.mxu1 %v1808_v39  ;;  %1644 = vmatprep.subr.bf16.mxu0 %v1809_v40 }
  0x5a   :  { %1666 = vmatprep.subr.bf16.mxu1 %v1810_v41 }
  0x5c   :  { %1645 = vmatpush3.bf16.msra.mxu0 %v1811_v42 }
  0x5d   :  { %1667 = vmatpush3.bf16.msra.mxu1 %v1812_v43  ;;  %1646 = vmatprep.subr.bf16.mxu0 %v1813_v44 }
  0x5e   :  { %1668 = vmatprep.subr.bf16.mxu1 %v1814_v45 }
  0x60   :  { %1647 = vmatpush3.bf16.msra.mxu0 %v1815_v46 }
  0x61   :  { %1669 = vmatpush3.bf16.msra.mxu1 %v1816_v47  ;;  %1676 = vmatprep.subr.bf16.mxu0 %v1817_v56 }
  0x62   :  { %1698 = vmatprep.subr.bf16.mxu1 %v1818_v57 }
  0x63   :  { %1272 = vmatmul.mubr.bf16.vlgmr.msra.gmra.mrb[8].mxu0 %v40_v54 }
  0x64   :  { %1312 = vmatmul.mubr.bf16.vlgmr.msra.gmra.mrb[8].mxu1 %v42_v55  ;;  %1677 = vmatpush3.bf16.msra.mxu0 %v1819_v58 }
  0x65   :  { %1699 = vmatpush3.bf16.msra.mxu1 %v1820_v59  ;;  %1678 = vmatprep.subr.bf16.mxu0 %v1821_v60 }
  0x66   :  { %1700 = vmatprep.subr.bf16.mxu1 %v1822_v61 }
  0x68   :  { %1679 = vmatpush3.bf16.msra.mxu0 %v1823_v62 }
  0x69   :  { %1701 = vmatpush3.bf16.msra.mxu1 %v1824_v63  ;;  %1680 = vmatprep.subr.bf16.mxu0 %v1825_v0 }
  0x6a   :  { %1702 = vmatprep.subr.bf16.mxu1 %v1826_v1 }
  0x6c   :  { %1681 = vmatpush3.bf16.msra.mxu0 %v1827_v2 }
  0x6d   :  { %1703 = vmatpush3.bf16.msra.mxu1 %v1828_v3  ;;  %1682 = vmatprep.subr.bf16.mxu0 %v1829_v4 }
  0x6e   :  { %1704 = vmatprep.subr.bf16.mxu1 %v1830_v5 }
  0x70   :  { %1683 = vmatpush3.bf16.msra.mxu0 %v1831_v6 }
  0x71   :  { %1705 = vmatpush3.bf16.msra.mxu1 %v1832_v7  ;;  %1684 = vmatprep.subr.bf16.mxu0 %v1833_v8 }
  0x72   :  { %1706 = vmatprep.subr.bf16.mxu1 %v1834_v9 }
  0x74   :  { %1685 = vmatpush3.bf16.msra.mxu0 %v1835_v10 }
  0x75   :  { %1707 = vmatpush3.bf16.msra.mxu1 %v1836_v11  ;;  %1686 = vmatprep.subr.bf16.mxu0 %v1837_v12 }
  0x76   :  { %1708 = vmatprep.subr.bf16.mxu1 %v1838_v13 }
  0x78   :  { %1687 = vmatpush3.bf16.msra.mxu0 %v1839_v14 }
  0x79   :  { %1709 = vmatpush3.bf16.msra.mxu1 %v1840_v15  ;;  %1688 = vmatprep.subr.bf16.mxu0 %v1841_v16 }
  0x7a   :  { %1710 = vmatprep.subr.bf16.mxu1 %v1842_v17 }
  0x7c   :  { %1689 = vmatpush3.bf16.msra.mxu0 %v1843_v18 }
  0x7d   :  { %1711 = vmatpush3.bf16.msra.mxu1 %v1844_v19  ;;  %1690 = vmatprep.subr.bf16.mxu0 %v1845_v20 }
  0x7e   :  { %1712 = vmatprep.subr.bf16.mxu1 %v1846_v21 }
  0x80   :  { %1691 = vmatpush3.bf16.msra.mxu0 %v1847_v22 }
  0x81   :  { %1713 = vmatpush3.bf16.msra.mxu1 %v1848_v23 }
  0x82   :  { %8 = vsyncpa [#allocation3], 0  ;;  %v46_v31 = vpack.c.bf16 %v30_v30, %v30_v30  ;;  %1351 = vmatprep.mubr.bf16.mxu0 %v45_v27  ;;  %1391 = vmatprep.mubr.bf16.mxu1 %v47_v28  ;;  %v1415_v34 = vld [vmem:[%s2343_s2] ss:$0 sm:$0xff]  ;;  %s1873_s0 = smov [#allocation2]   ;;  %vm1399_vm0 = vcmask 80896  }
  0x83   :  { %1352 = vmatmul.mubr.bf16.vlgmr.msra.gmra.mrb[12].mxu0 %v44_v29  ;;  %s1407_s2 = sshll.u32 %s1873_s0, 4  ;;  %s1408_s2 = int_to_ptr.vmem [resolvable:$true] %s1407_s2 }
  0x84   :  { %1392 = vmatmul.mubr.bf16.vlgmr.msra.gmra.mrb[12].mxu1 %v46_v31  ;;  %s1849_s4 = scalar_lea.vmem %s1408_s2, 128  ;;  %p1854_p1 = scmp.lt.s32.totalorder %s1408_s2, %s1408_s2 }
  0x85   :  { %p1850_p0 = scmp.ne.s32.totalorder %s1408_s2, %s1849_s4  ;;  %p1855_p2 = scmp.lt.s32.totalorder %s1849_s4, %s1849_s4 }
  0x87   :  { %p1856_p3 = por %p1855_p2, %p1854_p1 }
  0x89   :  { %p1857_p4 = pnand %p1856_p3, %p1850_p0 }
  0xf6   :  { %v1560_v32 = vpop.f32.mrb[0].mxu0 }
  0xf7   :  { %v1582_v33 = vpop.f32.mrb[0].mxu1  ;;  %v1561_v35 = vpop.f32.mrb[1].mxu0 }
  0xf8   :  { %v1583_v36 = vpop.f32.mrb[1].mxu1  ;;  %v1562_v37 = vadd.f32 %v1561_v35, %v1560_v32  ;;  %v1563_v39 = vpop.f32.mrb[2].mxu0 }
  0xf9   :  { %v1584_v38 = vadd.f32 %v1583_v36, %v1582_v33  ;;  %v1585_v40 = vpop.f32.mrb[2].mxu1  ;;  %v1564_v41 = vpop.f32.mrb[3].mxu0 }
  0xfa   :  { %v1586_v42 = vpop.f32.mrb[3].mxu1  ;;  %v1114_v43 = vadd.f32 %v1562_v37, %v1415_v34 }
  0xfc   :  { %v1154_v44 = vadd.f32 %v1584_v38, %v1114_v43 }
 0x116   :  { %v1604_v45 = vpop.f32.mrb[4].mxu0 }
 0x117   :  { %v1626_v46 = vpop.f32.mrb[4].mxu1  ;;  %v1605_v47 = vpop.f32.mrb[5].mxu0 }
 0x118   :  { %v1606_v48 = vadd.f32 %v1605_v47, %v1604_v45  ;;  %v1627_v49 = vpop.f32.mrb[5].mxu1  ;;  %v1607_v50 = vpop.f32.mrb[6].mxu0 }
 0x119   :  { %v1628_v51 = vadd.f32 %v1627_v49, %v1626_v46  ;;  %v1629_v52 = vpop.f32.mrb[6].mxu1  ;;  %v1608_v53 = vpop.f32.mrb[7].mxu0 }
 0x11a   :  { %v1194_v54 = vadd.f32 %v1606_v48, %v1154_v44  ;;  %v1630_v55 = vpop.f32.mrb[7].mxu1 }
 0x11c   :  { %v1234_v56 = vadd.f32 %v1628_v51, %v1194_v54 }
 0x136   :  { %v1648_v57 = vpop.f32.mrb[8].mxu0 }
 0x137   :  { %v1670_v58 = vpop.f32.mrb[8].mxu1  ;;  %v1649_v59 = vpop.f32.mrb[9].mxu0 }
 0x138   :  { %v1650_v60 = vadd.f32 %v1649_v59, %v1648_v57  ;;  %v1671_v61 = vpop.f32.mrb[9].mxu1  ;;  %v1651_v62 = vpop.f32.mrb[10].mxu0 }
 0x139   :  { %v1672_v63 = vadd.f32 %v1671_v61, %v1670_v58  ;;  %v1673_v0 = vpop.f32.mrb[10].mxu1  ;;  %v1652_v1 = vpop.f32.mrb[11].mxu0 }
 0x13a   :  { %v1274_v2 = vadd.f32 %v1650_v60, %v1234_v56  ;;  %v1674_v3 = vpop.f32.mrb[11].mxu1 }
 0x13c   :  { %v1314_v4 = vadd.f32 %v1672_v63, %v1274_v2 }
 0x156   :  { %v1692_v5 = vpop.f32.mrb[12].mxu0 }
 0x157   :  { %v1714_v6 = vpop.f32.mrb[12].mxu1  ;;  %v1693_v7 = vpop.f32.mrb[13].mxu0 }
 0x158   :  { %v1715_v8 = vpop.f32.mrb[13].mxu1  ;;  %v1694_v9 = vadd.f32 %v1693_v7, %v1692_v5  ;;  %v1695_v11 = vpop.f32.mrb[14].mxu0 }
 0x159   :  { %v1716_v10 = vadd.f32 %v1715_v8, %v1714_v6  ;;  %v1717_v12 = vpop.f32.mrb[14].mxu1  ;;  %v1696_v13 = vpop.f32.mrb[15].mxu0 }
 0x15a   :  { %v1718_v14 = vpop.f32.mrb[15].mxu1  ;;  %v1354_v15 = vadd.f32 %v1694_v9, %v1314_v4 }
 0x15c   :  { %v1394_v16 = vadd.f32 %v1716_v10, %v1354_v15 }
 0x15e   :  { %1400 = vst.msk [vmem:[#allocation2] sm:$0xff] %vm1399_vm0, %v1394_v16 }
 0x15f   :  { %1860 = shalt.err (!%p1857_p4)
}
 0x160   :  { %s1861_s7 = scalar_lea.hbm %s2344_s3, 128 }
 0x161   :  { %p1862_p5 = scmp.ne.s32.totalorder %s2344_s3, %s1861_s7  ;;  %p1865_p6 = scmp.lt.u32.totalorder %s1861_s7, %s2344_s3 }
 0x163   :  { %p1867_p7 = pnand %p1865_p6, %p1862_p5 }
 0x165   :  { %1870 = shalt.err (!%p1867_p7)
}
 0x166   :  { %1410 = dma.vmem_to_hbm [thread:$0]  %s1408_s2, 128, %s2344_s3, [#allocation3]  }
 0x167   :  { %1871 = dma.done.wait [#allocation3], 128  }
 0x168   :  { %1872 = vsyncadd [#allocation3], 4294967168 }
 0x169   :  { %1414 = vsyncpa [#allocation3], 1 }

</bundles_post_ra>
